<compile_context>
chip_gen: v6e
topology: v6e:2x2x1
jax: 0.10.0
libtpu: 0.0.40
codegen_flags: <defaults>
</compile_context>

<pallas_src>
import math

import jax
import jax.numpy as jnp
from jax.experimental import pallas as pl
from jax.experimental.pallas import tpu as pltpu

LANE = 128
_TARGET_BLOCK_BYTES = 4 * 1024 * 1024   # ~4 MiB x-block per grid step
_MIN_GRID_STEPS = 4                     # keep the grid splittable across TCs


def _lcm(a, b):
    return a * b // math.gcd(a, b)


def _bcast_add_kernel(x_ref, r_ref, o_ref):
    # x_ref/o_ref: (tsup, pr, cols) streaming tile of the flattened input.
    # r_ref:       (pr, cols) grid-invariant RTE pattern (f32, resident).
    o_ref[...] = (x_ref[...].astype(jnp.float32) + r_ref[...][None]).astype(o_ref.dtype)


def _launch_bcast_add(x3, pattern):
    """x3: (nsup, pr, cols); pattern: (pr, cols) f32 broadcast block."""
    nsup, pr, cols = x3.shape
    itemsize = x3.dtype.itemsize
    bytes_per_sup = pr * cols * itemsize

    # Block size chosen in bytes (dtype-independent), but capped so the grid
    # has >= _MIN_GRID_STEPS steps when there is enough work (v7x megacore).
    t_bytes = max(1, _TARGET_BLOCK_BYTES // bytes_per_sup)
    t_split = max(1, pl.cdiv(nsup, _MIN_GRID_STEPS))
    tsup = max(1, min(t_bytes, t_split, nsup))
    grid = (pl.cdiv(nsup, tsup),)

    total_bytes = x3.size * itemsize
    cost = pl.CostEstimate(
        flops=x3.size,                                  # one add per element
        transcendentals=0,
        bytes_accessed=2 * total_bytes + pattern.size * pattern.dtype.itemsize,
    )

    return pl.pallas_call(
        _bcast_add_kernel,
        out_shape=jax.ShapeDtypeStruct(x3.shape, x3.dtype),
        grid=grid,
        in_specs=[
            pl.BlockSpec((tsup, pr, cols), lambda i: (i, 0, 0)),   # streaming x
            pl.BlockSpec((pr, cols), lambda i: (0, 0)),            # resident RTE pattern
        ],
        out_specs=pl.BlockSpec((tsup, pr, cols), lambda i: (i, 0, 0)),
        compiler_params=pltpu.CompilerParams(
            dimension_semantics=("parallel",),
            vmem_limit_bytes=32 * 1024 * 1024,   # lift v5e's 16 MiB default
        ),
        cost_estimate=cost,
        # No input_output_aliases: without jit donation it costs a full copy.
    )(x3, pattern)


def rel_temporal_encoding(x, t, emb_table, w, b, rte_ratio):
    """x: (B, L, C); t: scalar timestamp; emb_table: (max_len, C);
    w: (C, C) nn.Linear weight (out, in); b: (C,)."""
    B, L, C = x.shape
    max_len = emb_table.shape[0]

    # --- Hoisted, grid-invariant RTE row: Linear(Embedding(t * ratio)) ---
    # TODO(synk): PyTorch raises on an out-of-range embedding index; we clamp.
    idx = jnp.clip(jnp.asarray(t * rte_ratio, dtype=jnp.int32), 0, max_len - 1)
    e = jnp.take(emb_table, idx, axis=0).astype(jnp.float32)           # (C,)
    rte_row = e @ w.T.astype(jnp.float32) + b.astype(jnp.float32)      # (C,) f32

    total = B * L * C
    if total % LANE == 0:
        # Lane-dense path (full-lane vst for any C).  Flat element f has
        # channel f % C; the per-row addend pattern repeats every
        # P = lcm(C,128)/128 rows.  Tiles start on multiples of pr (a
        # multiple of P), so one (pr,128) pattern block matches every tile.
        rows = total // LANE
        P = _lcm(C, LANE) // LANE
        unit = _lcm(8, P)
        pr = unit if rows % unit == 0 else rows      # full block if unaligned
        cols = LANE
        pattern = jnp.tile(rte_row, (pr * LANE) // C).reshape(pr, LANE)
    else:
        # Fallback: (B*L, C) rows; stores may be lane-masked if C % 128 != 0.
        rows = B * L
        pr = 1
        cols = C
        pattern = rte_row.reshape(1, C)

    x3 = x.reshape(rows // pr, pr, cols)
    out = _launch_bcast_add(x3, pattern)
    return out.reshape(B, L, C)


def make_sinusoid_table(max_len, n_hid):
    """Matches the PyTorch __init__ construction exactly."""
    position = jnp.arange(0.0, max_len, dtype=jnp.float32)[:, None]          # (max_len, 1)
    div_term = jnp.exp(jnp.arange(0, n_hid, 2, dtype=jnp.float32)
                       * -(math.log(10000.0) / n_hid))                       # (n_hid/2,)
    table = jnp.zeros((max_len, n_hid), dtype=jnp.float32)
    table = table.at[:, 0::2].set(jnp.sin(position * div_term) / math.sqrt(n_hid))
    table = table.at[:, 1::2].set(jnp.cos(position * div_term) / math.sqrt(n_hid))
    return table


def _run_case(key, B, L, n_hid, max_len, rte_ratio, t):
    kx, kw, kb = jax.random.split(key, 3)
    x = jax.random.normal(kx, (B, L, n_hid), dtype=jnp.float32)

    # nn.Linear(n_hid, n_hid) default init: U(-1/sqrt(n_hid), 1/sqrt(n_hid))
    bound = 1.0 / math.sqrt(n_hid)
    w = jax.random.uniform(kw, (n_hid, n_hid), jnp.float32, -bound, bound)
    b = jax.random.uniform(kb, (n_hid,), jnp.float32, -bound, bound)

    emb_table = make_sinusoid_table(max_len, n_hid)

    # Pure-JAX reference (same math as the PyTorch forward).
    rte_ref = emb_table[t * rte_ratio] @ w.T + b
    ref = x + rte_ref[None, None, :]

    out = rel_temporal_encoding(x, t, emb_table, w, b, rte_ratio)
    out = jax.block_until_ready(out)
    assert jnp.allclose(out, ref, atol=1e-5, rtol=1e-5), "mismatch vs reference"


if __name__ == "__main__":
    key = jax.random.PRNGKey(0)
    k1, k2 = jax.random.split(key)

    # Small case from the module defaults (single full block path).
    _run_case(k1, B=2, L=8, n_hid=32, max_len=100, rte_ratio=2, t=3)
    # Slightly larger case exercising the tiled, multi-step lane-dense path.
    _run_case(k2, B=2, L=64, n_hid=64, max_len=100, rte_ratio=2, t=5)

    print("KERNEL_OK")
</pallas_src>

<mosaic_0001>
module attributes {stable_mosaic.version = 11 : i64} {
  func.func @_bcast_add_kernel(%arg0: i32, %arg1: memref<1x4x128xf32, #tpu.memory_space<vmem>>, %arg2: memref<4x128xf32, #tpu.memory_space<vmem>>, %arg3: memref<1x4x128xf32, #tpu.memory_space<vmem>>) attributes {dimension_semantics = [#tpu.dimension_semantics<parallel>], iteration_bounds = array<i64: 1>, scalar_prefetch = 0 : i64, scratch_operands = 0 : i64, tpu.core_type = #tpu.core_type<tc>, window_params = [{transform_indices = @transform_0, window_bounds = array<i64: 1, 4, 128>}, {pipeline_mode = #tpu.pipeline_mode<synchronous>, transform_indices = @transform_1, window_bounds = array<i64: 4, 128>}, {transform_indices = @transform_2, window_bounds = array<i64: 1, 4, 128>}]} {
    %c0 = arith.constant 0 : index
    %c0_0 = arith.constant 0 : index
    %c0_1 = arith.constant 0 : index
    %0 = vector.load %arg1[%c0, %c0_0, %c0_1] : memref<1x4x128xf32, #tpu.memory_space<vmem>>, vector<1x4x128xf32>
    %c0_2 = arith.constant 0 : index
    %c0_3 = arith.constant 0 : index
    %1 = vector.load %arg2[%c0_2, %c0_3] : memref<4x128xf32, #tpu.memory_space<vmem>>, vector<4x128xf32>
    %2 = vector.shape_cast %1 : vector<4x128xf32> to vector<1x4x128xf32>
    %3 = arith.addf %0, %2 : vector<1x4x128xf32>
    %c0_4 = arith.constant 0 : index
    %c0_5 = arith.constant 0 : index
    %c0_6 = arith.constant 0 : index
    %4 = vector.load %arg3[%c0_4, %c0_5, %c0_6] : memref<1x4x128xf32, #tpu.memory_space<vmem>>, vector<1x4x128xf32>
    tpu.vector_store %arg3[%c0_4, %c0_5, %c0_6], %3 {strides = array<i32>} : memref<1x4x128xf32, #tpu.memory_space<vmem>>, vector<1x4x128xf32>,
    return
  }
  func.func @transform_0(%arg0: i32) -> (i32, i32, i32) {
    %c0_i32 = arith.constant 0 : i32
    %c0_i32_0 = arith.constant 0 : i32
    %c0_i32_1 = arith.constant 0 : i32
    return %arg0, %c0_i32, %c0_i32_0 : i32, i32, i32
  }
  func.func @transform_1(%arg0: i32) -> (i32, i32) {
    %c0_i32 = arith.constant 0 : i32
    %c0_i32_0 = arith.constant 0 : i32
    %c0_i32_1 = arith.constant 0 : i32
    return %c0_i32, %c0_i32_0 : i32, i32
  }
  func.func @transform_2(%arg0: i32) -> (i32, i32, i32) {
    %c0_i32 = arith.constant 0 : i32
    %c0_i32_0 = arith.constant 0 : i32
    %c0_i32_1 = arith.constant 0 : i32
    return %arg0, %c0_i32, %c0_i32_0 : i32, i32, i32
  }
}

</mosaic_0001>

<bundles_post_ra>
// kernel: tpu_custom_call.1
= control target key start
LH: loop header
LB: loop body
LE: loop exit
PB: predicated region body
PF: predicated region fallthrough
CT: control target
= control target key end

     0   :  { %7 = vsyncpa [#allocation3], 0  ;;  %s152_s0 = inlined_call_operand.hbm [shape: f32[1,4,128], index: 0, kind: input, shape index: {}]   ;;  %s153_s1 = inlined_call_operand.hbm [shape: f32[4,128], index: 1, kind: input, shape index: {}]   ;;  %s154_s2 = inlined_call_operand.hbm [shape: f32[1,4,128], index: 2, kind: output, shape index: {}]  }
   0x1   :  { %8 = vsyncpa [#allocation6], 0 }
   0x2   :  { %9 = vsyncpa [#allocation4], 0  ;;  %s125_s9 = smov [#allocation2]   ;;  %s126_s11 = smov [#allocation5]  }
   0x3   :  { %s16_s10 = sshll.u32 %s125_s9, 4  ;;  %s26_s12 = sshll.u32 %s126_s11, 4  ;;  %s17_s10 = int_to_ptr.vmem [resolvable:$true] %s16_s10  ;;  %s27_s12 = int_to_ptr.vmem [resolvable:$true] %s26_s12 }
   0x4   :  { %s67_s13 = scalar_lea.vmem %s17_s10, 64  ;;  %p72_p1 = scmp.lt.s32.totalorder %s17_s10, %s17_s10 }
   0x5   :  { %p68_p0 = scmp.ne.s32.totalorder %s17_s10, %s67_s13  ;;  %p73_p2 = scmp.lt.s32.totalorder %s67_s13, %s67_s13 }
   0x7   :  { %p74_p3 = por %p73_p2, %p72_p1 }
   0x9   :  { %p75_p4 = pnand %p74_p3, %p68_p0 }
   0xb   :  { %78 = shalt.err (!%p75_p4)
}
   0xc   :  { %19 = dma.hbm_to_vmem [thread:$0]  %s152_s0, 64, %s17_s10, [#allocation3]  }
   0xd   :  { %s87_s16 = scalar_lea.vmem %s27_s12, 64  ;;  %p92_p6 = scmp.lt.s32.totalorder %s27_s12, %s27_s12 }
   0xe   :  { %p88_p5 = scmp.ne.s32.totalorder %s27_s12, %s87_s16  ;;  %p93_p7 = scmp.lt.s32.totalorder %s87_s16, %s87_s16 }
  0x10   :  { %p94_p8 = por %p93_p7, %p92_p6 }
  0x12   :  { %p95_p9 = pnand %p94_p8, %p88_p5 }
  0x14   :  { %98 = shalt.err (!%p95_p9)
}
  0x15   :  { %29 = dma.hbm_to_vmem [thread:$0]  %s153_s1, 64, %s27_s12, [#allocation6]  }
  0x16   :  { %119 = dma.done.wait [#allocation3], 64  }
  0x17   :  { %120 = vsyncadd [#allocation3], 4294967232 }
  0x18   :  { %121 = dma.done.wait [#allocation6], 64  }
  0x19   :  { %122 = vsyncadd [#allocation6], 4294967232  ;;  %s127_s19 = smov [#allocation7]   ;;  %v36_v0 = vld [vmem:[#allocation2] sm:$0xf] }
  0x1a   :  { %s46_s20 = sshll.u32 %s127_s19, 4  ;;  %v37_v1 = vld [vmem:[#allocation5] sm:$0xf]  ;;  %s47_s20 = int_to_ptr.vmem [resolvable:$true] %s46_s20 }
  0x1b   :  { %v38_v2 = vadd.f32 %v37_v1, %v36_v0  ;;  %s99_s0 = scalar_lea.vmem %s47_s20, 64  ;;  %p104_p11 = scmp.lt.s32.totalorder %s47_s20, %s47_s20 }
  0x1c   :  { %p100_p10 = scmp.ne.s32.totalorder %s47_s20, %s99_s0  ;;  %p105_p12 = scmp.lt.s32.totalorder %s99_s0, %s99_s0 }
  0x1d   :  { %39 = vst [vmem:[#allocation7] sm:$0xf] %v38_v2 }
  0x1e   :  { %p106_p13 = por %p105_p12, %p104_p11 }
  0x20   :  { %p107_p0 = pnand %p106_p13, %p100_p10 }
  0x22   :  { %110 = shalt.err (!%p107_p0)
}
  0x23   :  { %49 = dma.vmem_to_hbm [thread:$0]  %s47_s20, 64, %s154_s2, [#allocation4]  }
  0x24   :  { %123 = dma.done.wait [#allocation4], 64  }
  0x25   :  { %124 = vsyncadd [#allocation4], 4294967232 }
  0x26   :  { %53 = vsyncpa [#allocation3], 1 }
  0x27   :  { %54 = vsyncpa [#allocation6], 1 }
  0x28   :  { %55 = vsyncpa [#allocation4], 1 }

</bundles_post_ra>
